<compile_context>
chip_gen: v7x
topology: tpu7x:2x2x1
jax: 0.10.0
libtpu: 0.0.40
codegen_flags: <defaults>
</compile_context>

<pallas_src>
import math
import jax
import jax.numpy as jnp
from jax import lax
from jax.experimental import pallas as pl
from jax.experimental.pallas import tpu as pltpu

_BN_EPS = 1e-5


# ----------------------------------------------------------------------------
# Fused Tree kernel: one grid step per batch block, everything in VMEM/vregs.
# ----------------------------------------------------------------------------
def _make_tree_kernel(H, blk_n):
    M = blk_n * H

    def kernel(x_ref, w3_ref, wr_ref, b_ref, o_ref):
        # x_ref : (blk_n, H, W*C)        folded input images (f32)
        # w3_ref: (4, 3*W*C, W*C)        Toeplitz-expanded, BN-folded 3x3 weights (bf16)
        # wr_ref: (2, W*C, W*C)          block-diag expanded root 1x1 weights (bf16)
        # b_ref : (5, W*C)               folded BN shifts (4 convs + root) (f32)
        WC = x_ref.shape[2]

        x0 = x_ref[...].reshape(M, WC).astype(jnp.float32)       # (M, WC)

        # Per-image row index (no modulo needed: build it in (blk_n, H, WC)).
        h_idx = lax.broadcasted_iota(jnp.int32, (blk_n, H, WC), 1).reshape(M, WC)
        top_keep = h_idx != 0          # row h-1 exists within the same image
        bot_keep = h_idx != H - 1      # row h+1 exists within the same image

        def conv3x3_bn(inp, idx):
            # inp: (M, WC) f32.  One fused MXU dot with K = 3*WC.
            up = jnp.where(top_keep, pltpu.roll(inp, shift=1, axis=0), 0.0)
            dn = jnp.where(bot_keep, pltpu.roll(inp, shift=M - 1, axis=0), 0.0)
            lhs = jnp.concatenate(
                [up.astype(jnp.bfloat16),
                 inp.astype(jnp.bfloat16),
                 dn.astype(jnp.bfloat16)], axis=-1)               # (M, 3*WC) bf16
            acc = jnp.dot(lhs, w3_ref[idx],
                          preferred_element_type=jnp.float32)     # (M, WC) f32
            return acc + b_ref[idx:idx + 1, :]                    # folded BN shift

        # tree1 = BasicBlock(x, residual=x)
        y = jnp.maximum(conv3x3_bn(x0, 0), 0.0)
        x1 = jnp.maximum(conv3x3_bn(y, 1) + x0, 0.0)

        # tree2 = BasicBlock(x1, residual=x1)
        y = jnp.maximum(conv3x3_bn(x1, 2), 0.0)
        x2 = jnp.maximum(conv3x3_bn(y, 3) + x1, 0.0)

        # Root: conv1x1(cat([x2, x1])) + bn + relu  ==  x2 @ Wr0 + x1 @ Wr1 + b
        r = (jnp.dot(x2.astype(jnp.bfloat16), wr_ref[0],
                     preferred_element_type=jnp.float32)
             + jnp.dot(x1.astype(jnp.bfloat16), wr_ref[1],
                       preferred_element_type=jnp.float32)
             + b_ref[4:5, :])
        o_ref[...] = jnp.maximum(r, 0.0).reshape(blk_n, H, WC).astype(o_ref.dtype)

    return kernel


def tree_forward(params, x_nchw, operands=None, images_per_block=None):
    """x_nchw: (N, C, H, W) like PyTorch.  Returns (N, C, H, W)."""
    N, C, H, Wimg = x_nchw.shape
    WC = Wimg * C
    if operands is None:
        operands = prepare_kernel_operands(params, Wimg)
    w3, wr, b = operands

    # Fold as many images as reasonable into one block so the MXU M-dim grows;
    # larger N would still split into multiple "parallel" grid steps (megacore).
    if images_per_block is None:
        images_per_block = max(1, min(N, max(1, 256 // H)))
    while N % images_per_block:
        images_per_block -= 1
    blk_n = images_per_block
    grid_n = N // blk_n

    # Single relayout to the lane-dense folded layout (N, H, W*C).
    # TODO(synk): in a full DLA network keep activations in this folded layout
    # between layers and drop the NCHW<->folded transposes entirely.
    xf = jnp.transpose(x_nchw, (0, 2, 3, 1)).reshape(N, H, WC)

    flops = 2 * N * H * WC * WC * (4 * 3 + 2)
    bytes_accessed = 2 * N * H * WC * 4 + w3.size * 2 + wr.size * 2 + b.size * 4

    outf = pl.pallas_call(
        _make_tree_kernel(H, blk_n),
        out_shape=jax.ShapeDtypeStruct((N, H, WC), x_nchw.dtype),
        grid=(grid_n,),
        in_specs=[
            pl.BlockSpec((blk_n, H, WC), lambda n: (n, 0, 0)),
            pl.BlockSpec((4, 3 * WC, WC), lambda n: (0, 0, 0)),
            pl.BlockSpec((2, WC, WC), lambda n: (0, 0, 0)),
            pl.BlockSpec((5, WC), lambda n: (0, 0)),
        ],
        out_specs=pl.BlockSpec((blk_n, H, WC), lambda n: (n, 0, 0)),
        compiler_params=pltpu.CompilerParams(
            dimension_semantics=("parallel",)),
        cost_estimate=pl.CostEstimate(
            flops=flops, transcendentals=0, bytes_accessed=bytes_accessed),
    )(xf, w3, wr, b)

    return outf.reshape(N, H, Wimg, C).transpose(0, 3, 1, 2)


# ----------------------------------------------------------------------------
# One-time weight preparation: fold BN, expand to lane-dense matmul operands.
#
# Folded layout: xf[h, w*C + c] = x[h, w, c].
# A 3x3/pad-1 conv becomes  out[h] = [x[h-1] | x[h] | x[h+1]] @ W3   with
#   W3 = concat_kh(M[kh]),  M[kh][j*C + ci, k*C + co] =
#        (W*bn_scale)[kh, j-k+1, ci, co] if |j-k| <= 1 else 0
# (block-tridiagonal "Toeplitz" expansion over the image width).
# Weights are stored bf16 (MXU-native); BN shifts stay f32.
# ----------------------------------------------------------------------------
def prepare_kernel_operands(params, Wimg):
    C = params["tree1"]["w1"].shape[2]
    WC = Wimg * C

    def expand3x3(w, scale):
        wf = (w * scale).astype(jnp.float32)                     # (3,3,C,C)
        j = jnp.arange(Wimg)[None, :, None]
        k = jnp.arange(Wimg)[None, None, :]
        d = jnp.arange(3)[:, None, None]
        ind = (j == (k + d - 1)).astype(jnp.float32)             # (3,Wimg,Wimg)
        m = jnp.einsum("djk,xdio->xjiko", ind, wf)               # (3,Wimg,C,Wimg,C)
        return m.reshape(3 * WC, WC)                             # fused K = 3*WC

    def expand1x1(w2c, scale):
        wf = (w2c * scale).astype(jnp.float32)                   # (2C, C)
        eye = jnp.eye(Wimg, dtype=jnp.float32)
        m0 = jnp.einsum("jk,io->jiko", eye, wf[:C]).reshape(WC, WC)   # for x2
        m1 = jnp.einsum("jk,io->jiko", eye, wf[C:]).reshape(WC, WC)   # for x1
        return jnp.stack([m0, m1])

    t1, t2, rt = params["tree1"], params["tree2"], params["root"]
    w3 = jnp.stack([expand3x3(t1["w1"], t1["s1"]),
                    expand3x3(t1["w2"], t1["s2"]),
                    expand3x3(t2["w1"], t2["s1"]),
                    expand3x3(t2["w2"], t2["s2"])]).astype(jnp.bfloat16)  # (4,3WC,WC)
    wr = expand1x1(rt["w"][0, 0], rt["s"]).astype(jnp.bfloat16)           # (2,WC,WC)
    b = jnp.stack([jnp.tile(t1["b1"], Wimg), jnp.tile(t1["b2"], Wimg),
                   jnp.tile(t2["b1"], Wimg), jnp.tile(t2["b2"], Wimg),
                   jnp.tile(rt["b"], Wimg)]).astype(jnp.float32)          # (5,WC)
    return w3, wr, b


# ----------------------------------------------------------------------------
# Deterministic synthetic parameter init (raw conv weights + folded BN affine).
# ----------------------------------------------------------------------------
def _init_bn(key, c):
    k1, k2, k3, k4 = jax.random.split(key, 4)
    gamma = 1.0 + 0.1 * jax.random.normal(k1, (c,), jnp.float32)
    beta = 0.1 * jax.random.normal(k2, (c,), jnp.float32)
    mean = 0.1 * jax.random.normal(k3, (c,), jnp.float32)
    var = 1.0 + 0.1 * jax.random.uniform(k4, (c,), jnp.float32)
    scale = gamma / jnp.sqrt(var + _BN_EPS)
    shift = beta - mean * scale
    return scale, shift


def _init_conv(key, kh, kw, cin, cout):
    fan = kh * kw * cin
    return (jax.random.normal(key, (kh, kw, cin, cout), jnp.float32)
            / math.sqrt(fan))


def init_basic_block(key, cin, cout):
    k1, k2, k3, k4 = jax.random.split(key, 4)
    s1, b1 = _init_bn(k2, cout)
    s2, b2 = _init_bn(k4, cout)
    return dict(w1=_init_conv(k1, 3, 3, cin, cout), s1=s1, b1=b1,
                w2=_init_conv(k3, 3, 3, cout, cout), s2=s2, b2=b2)


def init_root(key, root_dim, cout):
    k1, k2 = jax.random.split(key, 2)
    s, b = _init_bn(k2, cout)
    return dict(w=_init_conv(k1, 1, 1, root_dim, cout), s=s, b=b)


def init_tree(key, channels):
    # levels=1, in_channels == out_channels == channels, root_dim = 2*channels
    k1, k2, k3 = jax.random.split(key, 3)
    return dict(
        tree1=init_basic_block(k1, channels, channels),
        tree2=init_basic_block(k2, channels, channels),
        root=init_root(k3, 2 * channels, channels),
    )


# ----------------------------------------------------------------------------
# Pure-JAX reference (unfolded conv -> BN -> residual -> ReLU), for validation.
# ----------------------------------------------------------------------------
def _ref_conv_bn(x, w, scale, shift, pad, residual=None, relu=True):
    y = lax.conv_general_dilated(
        x, w, (1, 1), [(pad, pad), (pad, pad)],
        dimension_numbers=("NHWC", "HWIO", "NHWC"),
        precision=lax.Precision.HIGHEST)
    y = y * scale + shift
    if residual is not None:
        y = y + residual
    if relu:
        y = jnp.maximum(y, 0.0)
    return y


def tree_forward_ref(params, x_nchw):
    x = jnp.transpose(x_nchw, (0, 2, 3, 1))
    p1, p2, pr = params["tree1"], params["tree2"], params["root"]
    y = _ref_conv_bn(x, p1["w1"], p1["s1"], p1["b1"], 1)
    x1 = _ref_conv_bn(y, p1["w2"], p1["s2"], p1["b2"], 1, residual=x)
    y = _ref_conv_bn(x1, p2["w1"], p2["s1"], p2["b1"], 1)
    x2 = _ref_conv_bn(y, p2["w2"], p2["s2"], p2["b2"], 1, residual=x1)
    cat = jnp.concatenate([x2, x1], axis=-1)
    out = _ref_conv_bn(cat, pr["w"], pr["s"], pr["b"], 0)
    return jnp.transpose(out, (0, 3, 1, 2))


# ----------------------------------------------------------------------------
if __name__ == "__main__":
    key = jax.random.PRNGKey(0)
    k_x, k_p = jax.random.split(key)

    N, C, H, W = 2, 8, 16, 16            # W*C = 128 -> lane-dense folded layout
    x = jax.random.normal(k_x, (N, C, H, W), jnp.float32)   # NCHW like PyTorch
    params = init_tree(k_p, C)
    operands = prepare_kernel_operands(params, W)           # fold/expand once

    fwd = jax.jit(lambda xx: tree_forward(params, xx, operands))
    out = jax.block_until_ready(fwd(x))

    assert out.shape == (N, C, H, W)
    assert bool(jnp.all(jnp.isfinite(out)))

    ref = jax.block_until_ready(jax.jit(lambda xx: tree_forward_ref(params, xx))(x))
    err = float(jnp.max(jnp.abs(out - ref)))
    # bf16 MXU operands (per perf guidance) vs a HIGHEST-precision f32 reference:
    # tolerance relaxed accordingly (typical max-abs error is ~1e-2-3e-2 here).
    assert err < 7.5e-2, f"max abs err vs reference: {err}"

    print("KERNEL_OK")
</pallas_src>

<mosaic_0001>
module attributes {stable_mosaic.version = 11 : i64} {
  func.func @kernel(%arg0: i32, %arg1: memref<2x16x128xf32, #tpu.memory_space<vmem>>, %arg2: memref<4x384x128xbf16, #tpu.memory_space<vmem>>, %arg3: memref<2x128x128xbf16, #tpu.memory_space<vmem>>, %arg4: memref<5x128xf32, #tpu.memory_space<vmem>>, %arg5: memref<2x16x128xf32, #tpu.memory_space<vmem>>) attributes {dimension_semantics = [#tpu.dimension_semantics<parallel>], iteration_bounds = array<i64: 1>, scalar_prefetch = 0 : i64, scratch_operands = 0 : i64, tpu.core_type = #tpu.core_type<tc>, window_params = [{transform_indices = @transform_0, window_bounds = array<i64: 2, 16, 128>}, {pipeline_mode = #tpu.pipeline_mode<synchronous>, transform_indices = @transform_1, window_bounds = array<i64: 4, 384, 128>}, {pipeline_mode = #tpu.pipeline_mode<synchronous>, transform_indices = @transform_2, window_bounds = array<i64: 2, 128, 128>}, {pipeline_mode = #tpu.pipeline_mode<synchronous>, transform_indices = @transform_3, window_bounds = array<i64: 5, 128>}, {transform_indices = @transform_4, window_bounds = array<i64: 2, 16, 128>}]} {
    %c0 = arith.constant 0 : index
    %c0_0 = arith.constant 0 : index
    %c0_1 = arith.constant 0 : index
    %0 = vector.load %arg1[%c0, %c0_0, %c0_1] : memref<2x16x128xf32, #tpu.memory_space<vmem>>, vector<2x16x128xf32>
    %1 = vector.shape_cast %0 : vector<2x16x128xf32> to vector<32x128xf32>
    %2 = tpu.iota {dimensions = array<i32: 1>} : vector<2x16x128xi32>
    %3 = vector.shape_cast %2 : vector<2x16x128xi32> to vector<32x128xi32>
    %c0_i32 = arith.constant 0 : i32
    %4 = vector.broadcast %c0_i32 : i32 to vector<32x128xi32>
    %5 = arith.cmpi ne, %3, %4 : vector<32x128xi32>
    %c15_i32 = arith.constant 15 : i32
    %6 = vector.broadcast %c15_i32 : i32 to vector<32x128xi32>
    %7 = arith.cmpi ne, %3, %6 : vector<32x128xi32>
    %c1_i32 = arith.constant 1 : i32
    %8 = tpu.dynamic_rotate %1 by %c1_i32 dim 0 : vector<32x128xf32>, i32 -> vector<32x128xf32>
    %cst = arith.constant 0.000000e+00 : f32
    %9 = vector.broadcast %cst : f32 to vector<32x128xf32>
    %10 = arith.select %5, %8, %9 : vector<32x128xi1>, vector<32x128xf32>
    %c31_i32 = arith.constant 31 : i32
    %11 = tpu.dynamic_rotate %1 by %c31_i32 dim 0 : vector<32x128xf32>, i32 -> vector<32x128xf32>
    %cst_2 = arith.constant 0.000000e+00 : f32
    %12 = vector.broadcast %cst_2 : f32 to vector<32x128xf32>
    %13 = arith.select %7, %11, %12 : vector<32x128xi1>, vector<32x128xf32>
    %14 = arith.truncf %10 : vector<32x128xf32> to vector<32x128xbf16>
    %15 = arith.truncf %1 : vector<32x128xf32> to vector<32x128xbf16>
    %16 = arith.truncf %13 : vector<32x128xf32> to vector<32x128xbf16>
    %17 = tpu.concatenate %14, %15, %16 in 1 : vector<32x128xbf16>, vector<32x128xbf16>, vector<32x128xbf16> -> vector<32x384xbf16>
    %c0_3 = arith.constant 0 : index
    %c0_4 = arith.constant 0 : index
    %c0_5 = arith.constant 0 : index
    %18 = vector.load %arg2[%c0_3, %c0_4, %c0_5] : memref<4x384x128xbf16, #tpu.memory_space<vmem>>, vector<1x384x128xbf16>
    %19 = vector.shape_cast %18 : vector<1x384x128xbf16> to vector<384x128xbf16>
    %cst_6 = arith.constant dense<0.000000e+00> : vector<32x128xf32>
    %20 = tpu.matmul %17, %19, %cst_6 {dimension_numbers = #tpu.dot_dimension_numbers<[1], [0], [0], [1], [0, 0, 1, 1], [], []>} : vector<32x384xbf16>, vector<384x128xbf16>, vector<32x128xf32> -> vector<32x128xf32>
    %c0_7 = arith.constant 0 : index
    %c0_8 = arith.constant 0 : index
    %21 = vector.load %arg4[%c0_7, %c0_8] : memref<5x128xf32, #tpu.memory_space<vmem>>, vector<1x128xf32>
    %22 = vector.broadcast %21 : vector<1x128xf32> to vector<32x128xf32>
    %23 = arith.addf %20, %22 : vector<32x128xf32>
    %cst_9 = arith.constant 0.000000e+00 : f32
    %24 = vector.broadcast %cst_9 : f32 to vector<32x128xf32>
    %25 = arith.maximumf %23, %24 : vector<32x128xf32>
    %c1_i32_10 = arith.constant 1 : i32
    %26 = tpu.dynamic_rotate %25 by %c1_i32_10 dim 0 : vector<32x128xf32>, i32 -> vector<32x128xf32>
    %cst_11 = arith.constant 0.000000e+00 : f32
    %27 = vector.broadcast %cst_11 : f32 to vector<32x128xf32>
    %28 = arith.select %5, %26, %27 : vector<32x128xi1>, vector<32x128xf32>
    %c31_i32_12 = arith.constant 31 : i32
    %29 = tpu.dynamic_rotate %25 by %c31_i32_12 dim 0 : vector<32x128xf32>, i32 -> vector<32x128xf32>
    %cst_13 = arith.constant 0.000000e+00 : f32
    %30 = vector.broadcast %cst_13 : f32 to vector<32x128xf32>
    %31 = arith.select %7, %29, %30 : vector<32x128xi1>, vector<32x128xf32>
    %32 = arith.truncf %28 : vector<32x128xf32> to vector<32x128xbf16>
    %33 = arith.truncf %25 : vector<32x128xf32> to vector<32x128xbf16>
    %34 = arith.truncf %31 : vector<32x128xf32> to vector<32x128xbf16>
    %35 = tpu.concatenate %32, %33, %34 in 1 : vector<32x128xbf16>, vector<32x128xbf16>, vector<32x128xbf16> -> vector<32x384xbf16>
    %c1 = arith.constant 1 : index
    %c0_14 = arith.constant 0 : index
    %c0_15 = arith.constant 0 : index
    %36 = vector.load %arg2[%c1, %c0_14, %c0_15] : memref<4x384x128xbf16, #tpu.memory_space<vmem>>, vector<1x384x128xbf16>
    %37 = vector.shape_cast %36 : vector<1x384x128xbf16> to vector<384x128xbf16>
    %cst_16 = arith.constant dense<0.000000e+00> : vector<32x128xf32>
    %38 = tpu.matmul %35, %37, %cst_16 {dimension_numbers = #tpu.dot_dimension_numbers<[1], [0], [0], [1], [0, 0, 1, 1], [], []>} : vector<32x384xbf16>, vector<384x128xbf16>, vector<32x128xf32> -> vector<32x128xf32>
    %c1_17 = arith.constant 1 : index
    %c0_18 = arith.constant 0 : index
    %39 = vector.load %arg4[%c1_17, %c0_18] : memref<5x128xf32, #tpu.memory_space<vmem>>, vector<1x128xf32>
    %40 = vector.broadcast %39 : vector<1x128xf32> to vector<32x128xf32>
    %41 = arith.addf %38, %40 : vector<32x128xf32>
    %42 = arith.addf %41, %1 : vector<32x128xf32>
    %cst_19 = arith.constant 0.000000e+00 : f32
    %43 = vector.broadcast %cst_19 : f32 to vector<32x128xf32>
    %44 = arith.maximumf %42, %43 : vector<32x128xf32>
    %c1_i32_20 = arith.constant 1 : i32
    %45 = tpu.dynamic_rotate %44 by %c1_i32_20 dim 0 : vector<32x128xf32>, i32 -> vector<32x128xf32>
    %cst_21 = arith.constant 0.000000e+00 : f32
    %46 = vector.broadcast %cst_21 : f32 to vector<32x128xf32>
    %47 = arith.select %5, %45, %46 : vector<32x128xi1>, vector<32x128xf32>
    %c31_i32_22 = arith.constant 31 : i32
    %48 = tpu.dynamic_rotate %44 by %c31_i32_22 dim 0 : vector<32x128xf32>, i32 -> vector<32x128xf32>
    %cst_23 = arith.constant 0.000000e+00 : f32
    %49 = vector.broadcast %cst_23 : f32 to vector<32x128xf32>
    %50 = arith.select %7, %48, %49 : vector<32x128xi1>, vector<32x128xf32>
    %51 = arith.truncf %47 : vector<32x128xf32> to vector<32x128xbf16>
    %52 = arith.truncf %44 : vector<32x128xf32> to vector<32x128xbf16>
    %53 = arith.truncf %50 : vector<32x128xf32> to vector<32x128xbf16>
    %54 = tpu.concatenate %51, %52, %53 in 1 : vector<32x128xbf16>, vector<32x128xbf16>, vector<32x128xbf16> -> vector<32x384xbf16>
    %c2 = arith.constant 2 : index
    %c0_24 = arith.constant 0 : index
    %c0_25 = arith.constant 0 : index
    %55 = vector.load %arg2[%c2, %c0_24, %c0_25] : memref<4x384x128xbf16, #tpu.memory_space<vmem>>, vector<1x384x128xbf16>
    %56 = vector.shape_cast %55 : vector<1x384x128xbf16> to vector<384x128xbf16>
    %cst_26 = arith.constant dense<0.000000e+00> : vector<32x128xf32>
    %57 = tpu.matmul %54, %56, %cst_26 {dimension_numbers = #tpu.dot_dimension_numbers<[1], [0], [0], [1], [0, 0, 1, 1], [], []>} : vector<32x384xbf16>, vector<384x128xbf16>, vector<32x128xf32> -> vector<32x128xf32>
    %c2_27 = arith.constant 2 : index
    %c0_28 = arith.constant 0 : index
    %58 = vector.load %arg4[%c2_27, %c0_28] : memref<5x128xf32, #tpu.memory_space<vmem>>, vector<1x128xf32>
    %59 = vector.broadcast %58 : vector<1x128xf32> to vector<32x128xf32>
    %60 = arith.addf %57, %59 : vector<32x128xf32>
    %cst_29 = arith.constant 0.000000e+00 : f32
    %61 = vector.broadcast %cst_29 : f32 to vector<32x128xf32>
    %62 = arith.maximumf %60, %61 : vector<32x128xf32>
    %c1_i32_30 = arith.constant 1 : i32
    %63 = tpu.dynamic_rotate %62 by %c1_i32_30 dim 0 : vector<32x128xf32>, i32 -> vector<32x128xf32>
    %cst_31 = arith.constant 0.000000e+00 : f32
    %64 = vector.broadcast %cst_31 : f32 to vector<32x128xf32>
    %65 = arith.select %5, %63, %64 : vector<32x128xi1>, vector<32x128xf32>
    %c31_i32_32 = arith.constant 31 : i32
    %66 = tpu.dynamic_rotate %62 by %c31_i32_32 dim 0 : vector<32x128xf32>, i32 -> vector<32x128xf32>
    %cst_33 = arith.constant 0.000000e+00 : f32
    %67 = vector.broadcast %cst_33 : f32 to vector<32x128xf32>
    %68 = arith.select %7, %66, %67 : vector<32x128xi1>, vector<32x128xf32>
    %69 = arith.truncf %65 : vector<32x128xf32> to vector<32x128xbf16>
    %70 = arith.truncf %62 : vector<32x128xf32> to vector<32x128xbf16>
    %71 = arith.truncf %68 : vector<32x128xf32> to vector<32x128xbf16>
    %72 = tpu.concatenate %69, %70, %71 in 1 : vector<32x128xbf16>, vector<32x128xbf16>, vector<32x128xbf16> -> vector<32x384xbf16>
    %c3 = arith.constant 3 : index
    %c0_34 = arith.constant 0 : index
    %c0_35 = arith.constant 0 : index
    %73 = vector.load %arg2[%c3, %c0_34, %c0_35] : memref<4x384x128xbf16, #tpu.memory_space<vmem>>, vector<1x384x128xbf16>
    %74 = vector.shape_cast %73 : vector<1x384x128xbf16> to vector<384x128xbf16>
    %cst_36 = arith.constant dense<0.000000e+00> : vector<32x128xf32>
    %75 = tpu.matmul %72, %74, %cst_36 {dimension_numbers = #tpu.dot_dimension_numbers<[1], [0], [0], [1], [0, 0, 1, 1], [], []>} : vector<32x384xbf16>, vector<384x128xbf16>, vector<32x128xf32> -> vector<32x128xf32>
    %c3_37 = arith.constant 3 : index
    %c0_38 = arith.constant 0 : index
    %76 = vector.load %arg4[%c3_37, %c0_38] : memref<5x128xf32, #tpu.memory_space<vmem>>, vector<1x128xf32>
    %77 = vector.broadcast %76 : vector<1x128xf32> to vector<32x128xf32>
    %78 = arith.addf %75, %77 : vector<32x128xf32>
    %79 = arith.addf %78, %44 : vector<32x128xf32>
    %cst_39 = arith.constant 0.000000e+00 : f32
    %80 = vector.broadcast %cst_39 : f32 to vector<32x128xf32>
    %81 = arith.maximumf %79, %80 : vector<32x128xf32>
    %82 = arith.truncf %81 : vector<32x128xf32> to vector<32x128xbf16>
    %c0_40 = arith.constant 0 : index
    %c0_41 = arith.constant 0 : index
    %c0_42 = arith.constant 0 : index
    %83 = vector.load %arg3[%c0_40, %c0_41, %c0_42] : memref<2x128x128xbf16, #tpu.memory_space<vmem>>, vector<1x128x128xbf16>
    %84 = vector.shape_cast %83 : vector<1x128x128xbf16> to vector<128x128xbf16>
    %cst_43 = arith.constant dense<0.000000e+00> : vector<32x128xf32>
    %85 = tpu.matmul %82, %84, %cst_43 {dimension_numbers = #tpu.dot_dimension_numbers<[1], [0], [0], [1], [0, 0, 1, 1], [], []>} : vector<32x128xbf16>, vector<128x128xbf16>, vector<32x128xf32> -> vector<32x128xf32>
    %86 = arith.truncf %44 : vector<32x128xf32> to vector<32x128xbf16>
    %c1_44 = arith.constant 1 : index
    %c0_45 = arith.constant 0 : index
    %c0_46 = arith.constant 0 : index
    %87 = vector.load %arg3[%c1_44, %c0_45, %c0_46] : memref<2x128x128xbf16, #tpu.memory_space<vmem>>, vector<1x128x128xbf16>
    %88 = vector.shape_cast %87 : vector<1x128x128xbf16> to vector<128x128xbf16>
    %cst_47 = arith.constant dense<0.000000e+00> : vector<32x128xf32>
    %89 = tpu.matmul %86, %88, %cst_47 {dimension_numbers = #tpu.dot_dimension_numbers<[1], [0], [0], [1], [0, 0, 1, 1], [], []>} : vector<32x128xbf16>, vector<128x128xbf16>, vector<32x128xf32> -> vector<32x128xf32>
    %90 = arith.addf %85, %89 : vector<32x128xf32>
    %c4 = arith.constant 4 : index
    %c0_48 = arith.constant 0 : index
    %91 = vector.load %arg4[%c4, %c0_48] : memref<5x128xf32, #tpu.memory_space<vmem>>, vector<1x128xf32>
    %92 = vector.broadcast %91 : vector<1x128xf32> to vector<32x128xf32>
    %93 = arith.addf %90, %92 : vector<32x128xf32>
    %cst_49 = arith.constant 0.000000e+00 : f32
    %94 = vector.broadcast %cst_49 : f32 to vector<32x128xf32>
    %95 = arith.maximumf %93, %94 : vector<32x128xf32>
    %96 = vector.shape_cast %95 : vector<32x128xf32> to vector<2x16x128xf32>
    %c0_50 = arith.constant 0 : index
    %c0_51 = arith.constant 0 : index
    %c0_52 = arith.constant 0 : index
    %97 = vector.load %arg5[%c0_50, %c0_51, %c0_52] : memref<2x16x128xf32, #tpu.memory_space<vmem>>, vector<2x16x128xf32>
    tpu.vector_store %arg5[%c0_50, %c0_51, %c0_52], %96 {strides = array<i32>} : memref<2x16x128xf32, #tpu.memory_space<vmem>>, vector<2x16x128xf32>,
    return
  }
  func.func @transform_0(%arg0: i32) -> (i32, i32, i32) {
    %c0_i32 = arith.constant 0 : i32
    %c0_i32_0 = arith.constant 0 : i32
    %c0_i32_1 = arith.constant 0 : i32
    return %arg0, %c0_i32, %c0_i32_0 : i32, i32, i32
  }
  func.func @transform_1(%arg0: i32) -> (i32, i32, i32) {
    %c0_i32 = arith.constant 0 : i32
    %c0_i32_0 = arith.constant 0 : i32
    %c0_i32_1 = arith.constant 0 : i32
    %c0_i32_2 = arith.constant 0 : i32
    return %c0_i32, %c0_i32_0, %c0_i32_1 : i32, i32, i32
  }
  func.func @transform_2(%arg0: i32) -> (i32, i32, i32) {
    %c0_i32 = arith.constant 0 : i32
    %c0_i32_0 = arith.constant 0 : i32
    %c0_i32_1 = arith.constant 0 : i32
    %c0_i32_2 = arith.constant 0 : i32
    return %c0_i32, %c0_i32_0, %c0_i32_1 : i32, i32, i32
  }
  func.func @transform_3(%arg0: i32) -> (i32, i32) {
    %c0_i32 = arith.constant 0 : i32
    %c0_i32_0 = arith.constant 0 : i32
    %c0_i32_1 = arith.constant 0 : i32
    return %c0_i32, %c0_i32_0 : i32, i32
  }
  func.func @transform_4(%arg0: i32) -> (i32, i32, i32) {
    %c0_i32 = arith.constant 0 : i32
    %c0_i32_0 = arith.constant 0 : i32
    %c0_i32_1 = arith.constant 0 : i32
    return %arg0, %c0_i32, %c0_i32_0 : i32, i32, i32
  }
}

</mosaic_0001>

<bundles_post_ra>
// kernel: _lambda_.1
= control target key start
LH: loop header
LB: loop body
LE: loop exit
PB: predicated region body
PF: predicated region fallthrough
CT: control target
= control target key end

     0   :  { %9 = vsyncpa [#allocation3], 0  ;;  %s2368_s15 = smov [#allocation2]   ;;  %s2909_s0 = inlined_call_operand.vmem [shape: f32[2,16,128], index: 0, kind: input, shape index: {}]   ;;  %s2910_s1 = inlined_call_operand.vmem [shape: bf16[4,384,128], index: 1, kind: input, shape index: {}]   ;;  %s2911_s2 = inlined_call_operand.hbm [shape: bf16[2,128,128], index: 2, kind: input, shape index: {}]   ;;  %s2912_s3 = inlined_call_operand.vmem [shape: f32[5,128], index: 3, kind: input, shape index: {}]   ;;  %s2913_s4 = inlined_call_operand.vmem [shape: f32[2,16,128], index: 4, kind: output, shape index: {}]  }
   0x1   :  { %s19_s16 = sshll.u32 %s2368_s15, 4  ;;  %s2344_s19 = scalar_lea.hbm %s2911_s2, 2048  ;;  %s20_s16 = int_to_ptr.vmem [resolvable:$true] %s19_s16 }
   0x2   :  { %p2345_p0 = scmp.ne.s32.totalorder %s2911_s2, %s2344_s19  ;;  %p2348_p1 = scmp.lt.u32.totalorder %s2344_s19, %s2911_s2 }
   0x4   :  { %p2350_p2 = pnand %p2348_p1, %p2345_p0 }
   0x6   :  { %2353 = shalt.err (!%p2350_p2)
}
   0x7   :  { %s2354_s24 = scalar_lea.vmem %s20_s16, 2048  ;;  %p2359_p4 = scmp.lt.s32.totalorder %s20_s16, %s20_s16 }
   0x8   :  { %p2355_p3 = scmp.ne.s32.totalorder %s20_s16, %s2354_s24  ;;  %p2360_p5 = scmp.lt.s32.totalorder %s2354_s24, %s2354_s24 }
   0xa   :  { %p2361_p6 = por %p2360_p5, %p2359_p4 }
   0xc   :  { %p2362_p7 = pnand %p2361_p6, %p2355_p3 }
   0xe   :  { %2365 = shalt.err (!%p2362_p7)
}
   0xf   :  { %s2369_s25 = smov 64   ;;  %s2370_s26 = smov 4  }
  0x10   :  { %25 = dma.hbm_to_vmem [thread:$0]  %s2911_s2, 2048, %s20_s16, [#allocation3], %s2369_s25, %s2369_s25, %s2370_s26  }
  0x11   :  { %2366 = dma.done.wait [#allocation3], 2048  }
  0x12   :  { %2367 = vsyncadd [#allocation3], 4294965248  ;;  %v2232_v0 = vld [vmem:[%s2910_s1 + $0x40] sm:$0xff]   ;;  %v2234_v2 = vld [vmem:[%s2910_s1 + $0x48] sm:$0xff]   ;;  %v36_v9 = vlaneseq  ;;  %vm2371_vm4 = vmmov 1  }
  0x13   :  { %v2233_v1 = vld [vmem:[%s2910_s1] sm:$0xff]   ;;  %1932 = vmatprep.subr.bf16.mxu1 %v2232_v0  ;;  %v2235_v3 = vld [vmem:[%s2910_s1 + $0x8] sm:$0xff]   ;;  %v2236_v4 = vld [vmem:[%s2910_s1 + $0x50] sm:$0xff]  }
  0x14   :  { %1933 = vmatpush3.bf16.msra.mxu1 %v2233_v1  ;;  %v2237_v5 = vld [vmem:[%s2910_s1 + $0x10] sm:$0xff]   ;;  %v2238_v6 = vld [vmem:[%s2910_s1 + $0x58] sm:$0xff]   ;;  %v2240_v8 = vld [vmem:[%s2910_s1 + $0x60] sm:$0xff]   ;;  %v2442_v12 = vshrl.u32 %v36_v9, 7 }
  0x15   :  { %1934 = vmatprep.subr.bf16.mxu1 %v2234_v2  ;;  %v2239_v7 = vld [vmem:[%s2910_s1 + $0x18] sm:$0xff]   ;;  %v2241_v10 = vld [vmem:[%s2910_s1 + $0x20] sm:$0xff]   ;;  %v2242_v11 = vld [vmem:[%s2910_s1 + $0x68] sm:$0xff]  }
  0x16   :  { %v2447_v13 = vld [vmem:[%s2909_s0] sm:$0xff]  ;;  %v2452_v14 = vld [vmem:[%s2909_s0 + $0x8] sm:$0xff]  ;;  %v2244_v16 = vld [vmem:[%s2910_s1 + $0x70] sm:$0xff]   ;;  %v38_v18 = vadd.s32 8, %v2442_v12  ;;  %vm39_vm0 = vcmp.ne.s32.totalorder %v2442_v12, 0  ;;  %vm47_vm1 = vcmp.lt.s32.totalorder %v2442_v12, 1 }
  0x17   :  { %v2243_v15 = vld [vmem:[%s2910_s1 + $0x28] sm:$0xff]   ;;  %v71_v17 = vpack.c.bf16 %v2452_v14, %v2447_v13  ;;  %v2466_v19 = vld [vmem:[%s2909_s0 + $0x18] sm:$0xff]  ;;  %v2245_v20 = vld [vmem:[%s2910_s1 + $0x30] sm:$0xff]   ;;  %v43_v21 = vrot.slane %v2447_v13, 7  ;;  %v44_v22 = vrot.slane %v2452_v14, 7  ;;  %v56_v26 = vrot.slane %v2447_v13, 1 }
  0x18   :  { %1935 = vmatpush3.bf16.msra.mxu1 %v2235_v3  ;;  %vm42_vm2 = vcmp.ne.s32.totalorder %v38_v18, 15  ;;  %v46_v23 = vrot.slane %v2466_v19, 7  ;;  %v2479_v24 = vld [vmem:[%s2909_s0 + $0x10] sm:$0xff]  ;;  %v2246_v25 = vld [vmem:[%s2910_s1 + $0x78] sm:$0xff]   ;;  %v57_v28 = vrot.slane %v2452_v14, 1  ;;  %v59_v29 = vrot.slane %v2466_v19, 1  ;;  %vm2493_vm5 = vmpackc.low %vm2371_vm4, %vm39_vm0 }
  0x19   :  { %1936 = vmatprep.subr.bf16.mxu1 %v2236_v4  ;;  %304 = vmatprep.mubr.bf16.mxu1 %v71_v17  ;;  %v2247_v27 = vld [vmem:[%s2910_s1 + $0x38] sm:$0xff]   ;;  %vm60_vm3 = vcmp.lt.s32.totalorder %v2442_v12, 7  ;;  %v2248_v31 = vld [vmem:[%s2910_s1 + $0x80] sm:$0xff]   ;;  %v45_v32 = vrot.slane %v2479_v24, 7  ;;  %v58_v33 = vrot.slane %v2479_v24, 1  ;;  %v50_v34 = vsel %vm47_vm1, %v43_v21, %v44_v22  ;;  %v2249_v37 = vld [vmem:[%s2910_s1 + $0x88] sm:$0xff]  }
  0x1a   :  { %v51_v35 = vsel %vm47_vm1, %v46_v23, %v43_v21  ;;  %v72_v38 = vpack.c.bf16 %v2466_v19, %v2479_v24  ;;  %vm2512_vm6 = vmpackc.low %vm42_vm2, %vm2371_vm4  ;;  %v2250_v40 = vld [vmem:[%s2910_s1 + $0x90] sm:$0xff]   ;;  %v63_v44 = vsel %vm60_vm3, %v56_v26, %v57_v28  ;;  %v2251_v45 = vld [vmem:[%s2910_s1 + $0x98] sm:$0xff]   ;;  %v64_v52 = vsel %vm60_vm3, %v59_v29, %v56_v26 }
  0x1b   :  { %v1649_v36 = vpack.c.bf16 %v50_v34, %v51_v35  ;;  %v48_v41 = vsel %vm47_vm1, %v45_v32, %v46_v23  ;;  %v49_v42 = vsel %vm47_vm1, %v44_v22, %v45_v32  ;;  %v62_v43 = vsel %vm60_vm3, %v57_v28, %v58_v33  ;;  %v2252_v48 = vld [vmem:[%s2910_s1 + $0xa0] sm:$0xff]   ;;  %v2253_v49 = vld [vmem:[%s2910_s1 + $0xa8] sm:$0xff]   ;;  %v2254_v50 = vld [vmem:[%s2910_s1 + $0xb0] sm:$0xff]  }
  0x1c   :  { %1937 = vmatpush3.bf16.msra.mxu1 %v2237_v5  ;;  %v1652_v46 = vpack.c.bf16 %v48_v41, %v49_v42  ;;  %v1655_v47 = vpack.c.bf16 %v62_v43, %v63_v44  ;;  %v2255_v51 = vld [vmem:[%s2910_s1 + $0xb8] sm:$0xff]   ;;  %v61_v53 = vsel %vm60_vm3, %v58_v33, %v59_v29  ;;  %v2256_v55 = vld [vmem:[%s2910_s1 + $0x100] sm:$0xff]   ;;  %v2259_v58 = vld [vmem:[%s2910_s1 + $0x108] sm:$0xff]  }
  0x1d   :  { %1938 = vmatprep.subr.bf16.mxu1 %v2238_v6  ;;  %v1658_v54 = vpack.c.bf16 %v64_v52, %v61_v53  ;;  %v2257_v56 = vld [vmem:[%s2910_s1 + $0xc0] sm:$0xff]   ;;  %v2261_v59 = vld [vmem:[%s2910_s1 + $0x148] sm:$0xff]   ;;  %1970 = vmatprep.subr.bf16.mxu0 %v2256_v55  ;;  %v2262_v61 = vld [vmem:[%s2910_s1 + $0x110] sm:$0xff]  }
  0x1e   :  { %v2258_v57 = vld [vmem:[%s2910_s1 + $0x140] sm:$0xff]   ;;  %1971 = vmatpush3.bf16.msra.mxu0 %v2257_v56  ;;  %v2260_v60 = vld [vmem:[%s2910_s1 + $0xc8] sm:$0xff]   ;;  %v2264_v62 = vld [vmem:[%s2910_s1 + $0x150] sm:$0xff]  }
  0x1f   :  { %1972 = vmatprep.subr.bf16.mxu0 %v2259_v58  ;;  %v2263_v63 = vld [vmem:[%s2910_s1 + $0xd0] sm:$0xff]   ;;  %v2265_v0 = vld [vmem:[%s2910_s1 + $0x118] sm:$0xff]   ;;  %v2268_v3 = vld [vmem:[%s2910_s1 + $0x120] sm:$0xff]  }
  0x20   :  { %1939 = vmatpush3.bf16.msra.mxu1 %v2239_v7  ;;  %v2267_v1 = vld [vmem:[%s2910_s1 + $0x158] sm:$0xff]   ;;  %v2270_v4 = vld [vmem:[%s2910_s1 + $0x160] sm:$0xff]   ;;  %v2271_v6 = vld [vmem:[%s2910_s1 + $0x128] sm:$0xff]  }
  0x21   :  { %1940 = vmatprep.subr.bf16.mxu1 %v2240_v8  ;;  %v2266_v2 = vld [vmem:[%s2910_s1 + $0xd8] sm:$0xff]   ;;  %v2269_v5 = vld [vmem:[%s2910_s1 + $0xe0] sm:$0xff]   ;;  %v2272_v7 = vld [vmem:[%s2910_s1 + $0xe8] sm:$0xff]  }
  0x22   :  { %1973 = vmatpush3.bf16.msra.mxu0 %v2260_v60  ;;  %v2273_v8 = vld [vmem:[%s2910_s1 + $0x168] sm:$0xff]   ;;  %v2274_v9 = vld [vmem:[%s2910_s1 + $0x130] sm:$0xff]   ;;  %v2279_v17 = vld [vmem:[%s2910_s1 + $0x178] sm:$0xff]  }
  0x23   :  { %1974 = vmatprep.subr.bf16.mxu0 %v2262_v61  ;;  %v2280_v18 = vld [vmem:[%s2910_s1 + $0x1c0] sm:$0xff]   ;;  %v2331_v12 = vld [vmem:[#allocation2 + $0x58] sm:$0xff]   ;;  %v2334_v39 = vld [vmem:[#allocation2 + $0x70] sm:$0xff]  }
  0x24   :  { %1941 = vmatpush3.bf16.msra.mxu1 %v2241_v10  ;;  %v2275_v10 = vld [vmem:[%s2910_s1 + $0xf0] sm:$0xff]   ;;  %v1623_v35 = vld [vmem:[%s2912_s3] ss:$0 sm:$0xff]  ;;  %v2337_v30 = vld [vmem:[#allocation2 + $0x8] sm:$0xff]  }
  0x25   :  { %1942 = vmatprep.subr.bf16.mxu1 %v2242_v11  ;;  %v2276_v11 = vld [vmem:[%s2910_s1 + $0x170] sm:$0xff]  }
  0x26   :  { %1975 = vmatpush3.bf16.msra.mxu0 %v2263_v63 }
  0x27   :  { %1976 = vmatprep.subr.bf16.mxu0 %v2265_v0 }
  0x28   :  { %1943 = vmatpush3.bf16.msra.mxu1 %v2243_v15  ;;  %v2277_v15 = vld [vmem:[%s2910_s1 + $0x138] sm:$0xff]  }
  0x29   :  { %1944 = vmatprep.subr.bf16.mxu1 %v2244_v16  ;;  %v2278_v16 = vld [vmem:[%s2910_s1 + $0xf8] sm:$0xff]  }
  0x2a   :  { %1977 = vmatpush3.bf16.msra.mxu0 %v2266_v2 }
  0x2b   :  { %1978 = vmatprep.subr.bf16.mxu0 %v2268_v3 }
  0x2c   :  { %1945 = vmatpush3.bf16.msra.mxu1 %v2245_v20  ;;  %v2281_v20 = vld [vmem:[%s2910_s1 + $0x200] sm:$0xff]  }
  0x2d   :  { %1946 = vmatprep.subr.bf16.mxu1 %v2246_v25 }
  0x2e   :  { %1979 = vmatpush3.bf16.msra.mxu0 %v2269_v5 }
  0x2f   :  { %1980 = vmatprep.subr.bf16.mxu0 %v2271_v6 }
  0x30   :  { %1947 = vmatpush3.bf16.msra.mxu1 %v2247_v27 }
  0x31   :  { %2104 = vmatprep.subr.bf16.mxu1 %v2248_v31 }
  0x32   :  { %1981 = vmatpush3.bf16.msra.mxu0 %v2272_v7 }
  0x33   :  { %1650 = vmatmul.mubr.msk.bf16.vlgmr.msra.gmra.mrb[0].mxu1 %vm2493_vm5, %v1649_v36  ;;  %1982 = vmatprep.subr.bf16.mxu0 %v2274_v9 }
  0x34   :  { %2105 = vmatpush3.bf16.msra.mxu1 %v2248_v31  ;;  %312 = vmatprep.mubr.bf16.mxu1 %v72_v38 }
  0x35   :  { %2106 = vmatprep.subr.bf16.mxu1 %v2249_v37 }
  0x36   :  { %1983 = vmatpush3.bf16.msra.mxu0 %v2275_v10  ;;  %v2282_v10 = vld [vmem:[%s2910_s1 + $0x180] sm:$0xff]  }
  0x37   :  { %1984 = vmatprep.subr.bf16.mxu0 %v2277_v15  ;;  %v2283_v15 = vld [vmem:[%s2910_s1 + $0x1c8] sm:$0xff]  }
  0x38   :  { %2107 = vmatpush3.bf16.msra.mxu1 %v2249_v37 }
  0x39   :  { %2108 = vmatprep.subr.bf16.mxu1 %v2250_v40 }
  0x3a   :  { %1985 = vmatpush3.bf16.msra.mxu0 %v2278_v16  ;;  %v2284_v16 = vld [vmem:[%s2910_s1 + $0x208] sm:$0xff]  }
  0x3b   :  { %1653 = vmatmul.mubr.msk.bf16.gmra.mrb[4].mxu1 %vm2493_vm5, %v1652_v46  ;;  %2008 = vmatprep.subr.bf16.mxu0 %v2280_v18  ;;  %v2286_v18 = vld [vmem:[%s2910_s1 + $0x1d0] sm:$0xff]  }
  0x3c   :  { %2109 = vmatpush3.bf16.msra.mxu1 %v2250_v40  ;;  %2120 = vmatprep.mubr.msk.bf16.mxu1 %vm2512_vm6, %v1655_v47 }
  0x3d   :  { %2110 = vmatprep.subr.bf16.mxu1 %v2251_v45 }
  0x40   :  { %2111 = vmatpush3.bf16.msra.mxu1 %v2251_v45 }
  0x41   :  { %2112 = vmatprep.subr.bf16.mxu1 %v2252_v48 }
  0x44   :  { %2113 = vmatpush3.bf16.msra.mxu1 %v2252_v48 }
  0x45   :  { %2114 = vmatprep.subr.bf16.mxu1 %v2253_v49 }
  0x48   :  { %2115 = vmatpush3.bf16.msra.mxu1 %v2253_v49 }
  0x49   :  { %2116 = vmatprep.subr.bf16.mxu1 %v2254_v50 }
  0x4c   :  { %2117 = vmatpush3.bf16.msra.mxu1 %v2254_v50 }
  0x4d   :  { %2118 = vmatprep.subr.bf16.mxu1 %v2255_v51 }
  0x50   :  { %2119 = vmatpush3.bf16.msra.mxu1 %v2255_v51 }
  0x51   :  { %2124 = vmatprep.subr.bf16.mxu1 %v2258_v57 }
  0x53   :  { %2121 = vmatmul.mubr.msk.bf16.vlgmr.msra.gmra.mrb[8].mxu1 %vm2512_vm6, %v1658_v54 }
  0x54   :  { %2125 = vmatpush3.bf16.msra.mxu1 %v2258_v57 }
  0x55   :  { %2126 = vmatprep.subr.bf16.mxu1 %v2261_v59 }
  0x58   :  { %2127 = vmatpush3.bf16.msra.mxu1 %v2261_v59 }
  0x59   :  { %2128 = vmatprep.subr.bf16.mxu1 %v2264_v62 }
  0x5c   :  { %2129 = vmatpush3.bf16.msra.mxu1 %v2264_v62 }
  0x5d   :  { %2130 = vmatprep.subr.bf16.mxu1 %v2267_v1 }
  0x60   :  { %2131 = vmatpush3.bf16.msra.mxu1 %v2267_v1 }
  0x61   :  { %2132 = vmatprep.subr.bf16.mxu1 %v2270_v4 }
  0x64   :  { %2133 = vmatpush3.bf16.msra.mxu1 %v2270_v4 }
  0x65   :  { %2134 = vmatprep.subr.bf16.mxu1 %v2273_v8 }
  0x68   :  { %2135 = vmatpush3.bf16.msra.mxu1 %v2273_v8 }
  0x69   :  { %2136 = vmatprep.subr.bf16.mxu1 %v2276_v11 }
  0x6c   :  { %2137 = vmatpush3.bf16.msra.mxu1 %v2276_v11 }
  0x6d   :  { %2138 = vmatprep.subr.bf16.mxu1 %v2279_v17 }
  0x70   :  { %2139 = vmatpush3.bf16.msra.mxu1 %v2279_v17  ;;  %v2285_v17 = vld [vmem:[%s2910_s1 + $0x188] sm:$0xff]  }
  0x71   :  { %2144 = vmatprep.subr.bf16.mxu1 %v2281_v20 }
 0x106   :  { %v1948_v21 = vpop.f32.mrb[0].mxu1 }
 0x107   :  { %v1949_v22 = vpop.f32.mrb[1].mxu1 }
 0x108   :  { %v1950_v23 = vadd.f32 %v1949_v22, %v1948_v21  ;;  %v1951_v25 = vpop.f32.mrb[2].mxu1  ;;  %v2287_v21 = vld [vmem:[%s2910_s1 + $0x210] sm:$0xff]   ;;  %v2289_v22 = vld [vmem:[%s2910_s1 + $0x1d8] sm:$0xff]  }
 0x109   :  { %v1952_v26 = vpop.f32.mrb[3].mxu1 }
 0x10a   :  { %v1953_v27 = vadd.f32 %v1952_v26, %v1951_v25  ;;  %v307_v38 = vadd.f32 %v1950_v23, %v1623_v35  ;;  %v2290_v23 = vld [vmem:[%s2910_s1 + $0x218] sm:$0xff]   ;;  %v2292_v26 = vld [vmem:[%s2910_s1 + $0x1e0] sm:$0xff]  }
 0x10b   :  { %v2291_v25 = vld [vmem:[%s2910_s1 + $0x198] sm:$0xff]  }
 0x10c   :  { %v310_v45 = vadd.f32 %v1953_v27, %v1623_v35  ;;  %v2293_v27 = vld [vmem:[%s2910_s1 + $0x220] sm:$0xff]  }
 0x10e   :  { %v1954_v28 = vpop.f32.mrb[4].mxu1 }
 0x10f   :  { %v1955_v29 = vpop.f32.mrb[5].mxu1 }
 0x110   :  { %v1956_v31 = vadd.f32 %v1955_v29, %v1954_v28  ;;  %v1957_v32 = vpop.f32.mrb[6].mxu1  ;;  %v2294_v28 = vld [vmem:[%s2910_s1 + $0x1a0] sm:$0xff]   ;;  %v2295_v29 = vld [vmem:[%s2910_s1 + $0x1e8] sm:$0xff]  }
 0x111   :  { %v1958_v33 = vpop.f32.mrb[7].mxu1 }
 0x112   :  { %v1959_v34 = vadd.f32 %v1958_v33, %v1957_v32  ;;  %v315_v36 = vadd.f32 %v1956_v31, %v1623_v35  ;;  %v2296_v31 = vld [vmem:[%s2910_s1 + $0x228] sm:$0xff]   ;;  %v2298_v33 = vld [vmem:[%s2910_s1 + $0x1f0] sm:$0xff]  }
 0x113   :  { %v2297_v32 = vld [vmem:[%s2910_s1 + $0x1a8] sm:$0xff]  }
 0x114   :  { %v318_v42 = vadd.f32 %v1959_v34, %v1623_v35  ;;  %v2299_v34 = vld [vmem:[%s2910_s1 + $0x230] sm:$0xff]  }
 0x115   :  { %v2300_v35 = vld [vmem:[%s2910_s1 + $0x1b0] sm:$0xff]  }
 0x126   :  { %v2122_v37 = vpop.f32.mrb[8].mxu1 }
 0x127   :  { %v364_v40 = vadd.f32 %v2122_v37, %v315_v36  ;;  %v355_v41 = vpop.f32.mrb[9].mxu1  ;;  %v2301_v36 = vld [vmem:[%s2910_s1 + $0x1f8] sm:$0xff]  }
 0x128   :  { %v356_v43 = vadd.f32 %v355_v41, %v307_v38  ;;  %v2123_v44 = vpop.f32.mrb[10].mxu1  ;;  %v2302_v37 = vld [vmem:[%s2910_s1 + $0x238] sm:$0xff]   ;;  %v2731_v41 = vld [vmem:[%s2910_s1 + $0x2c0] sm:$0xff]  }
 0x129   :  { %v372_v46 = vmax.f32 %v364_v40, 0.0  ;;  %v367_v47 = vadd.f32 %v2123_v44, %v318_v42  ;;  %v358_v48 = vpop.f32.mrb[11].mxu1  ;;  %v2303_v38 = vld [vmem:[%s2910_s1 + $0x1b8] sm:$0xff]   ;;  %v2304_v40 = vld [vmem:[%s2910_s1 + $0x280] sm:$0xff]  }
 0x12a   :  { %v370_v49 = vmax.f32 %v356_v43, 0.0  ;;  %v359_v50 = vadd.f32 %v358_v48, %v310_v45  ;;  %v1708_v45 = vld [vmem:[%s2912_s3 + $0x1] ss:$0 sm:$0xff] }
 0x12b   :  { %v373_v51 = vmax.f32 %v367_v47, 0.0  ;;  %v376_v52 = vrot.slane %v372_v46, 7  ;;  %v388_v56 = vrot.slane %v372_v46, 1 }
 0x12c   :  { %v374_v53 = vrot.slane %v370_v49, 7  ;;  %v386_v54 = vrot.slane %v370_v49, 1  ;;  %v371_v55 = vmax.f32 %v359_v50, 0.0 }
 0x12d   :  { %v377_v57 = vrot.slane %v373_v51, 7  ;;  %v389_v58 = vrot.slane %v373_v51, 1  ;;  %v401_v59 = vpack.c.bf16 %v373_v51, %v372_v46 }
 0x12e   :  { %v375_v60 = vrot.slane %v371_v55, 7  ;;  %v387_v61 = vrot.slane %v371_v55, 1  ;;  %v400_v62 = vpack.c.bf16 %v371_v55, %v370_v49 }
 0x12f   :  { %v390_v63 = vsel %vm60_vm3, %v388_v56, %v389_v58  ;;  %v393_v0 = vsel %vm60_vm3, %v389_v58, %v386_v54  ;;  %v381_v1 = vsel %vm47_vm1, %v377_v57, %v374_v53  ;;  %v378_v2 = vsel %vm47_vm1, %v376_v52, %v377_v57 }
 0x130   :  { %v1743_v3 = vpack.c.bf16 %v393_v0, %v390_v63  ;;  %634 = vmatprep.mubr.bf16.mxu0 %v400_v62  ;;  %v380_v4 = vsel %vm47_vm1, %v374_v53, %v375_v60  ;;  %v391_v5 = vsel %vm60_vm3, %v387_v61, %v388_v56  ;;  %v392_v6 = vsel %vm60_vm3, %v386_v54, %v387_v61 }
 0x131   :  { %v1734_v7 = vpack.c.bf16 %v380_v4, %v381_v1  ;;  %v1740_v8 = vpack.c.bf16 %v391_v5, %v392_v6  ;;  %v379_v9 = vsel %vm47_vm1, %v375_v60, %v376_v52 }
 0x132   :  { %v1737_v11 = vpack.c.bf16 %v378_v2, %v379_v9 }
 0x133   :  { %1735 = vmatmul.mubr.msk.bf16.vlgmr.msra.gmra.mrb[0].mxu0 %vm2493_vm5, %v1734_v7  ;;  %2140 = vmatprep.mubr.msk.bf16.mxu1 %vm2512_vm6, %v1740_v8 }
 0x134   :  { %642 = vmatprep.mubr.bf16.mxu0 %v401_v59  ;;  %2141 = vmatmul.mubr.msk.bf16.vlgmr.msra.gmra.mrb[12].mxu1 %vm2512_vm6, %v1743_v3 }
 0x135   :  { %2009 = vmatpush3.bf16.msra.mxu0 %v2282_v10  ;;  %2145 = vmatpush3.bf16.msra.mxu1 %v2281_v20  ;;  %v2288_v20 = vld [vmem:[%s2910_s1 + $0x190] sm:$0xff]  }
 0x136   :  { %2010 = vmatprep.subr.bf16.mxu0 %v2283_v15  ;;  %2146 = vmatprep.subr.bf16.mxu1 %v2284_v16 }
 0x139   :  { %2147 = vmatpush3.bf16.msra.mxu1 %v2284_v16  ;;  %2011 = vmatpush3.bf16.msra.mxu0 %v2285_v17 }
 0x13a   :  { %2012 = vmatprep.subr.bf16.mxu0 %v2286_v18  ;;  %2148 = vmatprep.subr.bf16.mxu1 %v2287_v21 }
 0x13b   :  { %1738 = vmatmul.mubr.msk.bf16.gmra.mrb[4].mxu0 %vm2493_vm5, %v1737_v11 }
 0x13d   :  { %2013 = vmatpush3.bf16.msra.mxu0 %v2288_v20  ;;  %2149 = vmatpush3.bf16.msra.mxu1 %v2287_v21 }
 0x13e   :  { %2014 = vmatprep.subr.bf16.mxu0 %v2289_v22  ;;  %2150 = vmatprep.subr.bf16.mxu1 %v2290_v23 }
 0x141   :  { %2015 = vmatpush3.bf16.msra.mxu0 %v2291_v25  ;;  %2151 = vmatpush3.bf16.msra.mxu1 %v2290_v23 }
 0x142   :  { %2016 = vmatprep.subr.bf16.mxu0 %v2292_v26  ;;  %2152 = vmatprep.subr.bf16.mxu1 %v2293_v27 }
 0x145   :  { %2017 = vmatpush3.bf16.msra.mxu0 %v2294_v28  ;;  %2153 = vmatpush3.bf16.msra.mxu1 %v2293_v27  ;;  %v2305_v27 = vld [vmem:[%s2910_s1 + $0x240] sm:$0xff]  }
 0x146   :  { %2018 = vmatprep.subr.bf16.mxu0 %v2295_v29  ;;  %2154 = vmatprep.subr.bf16.mxu1 %v2296_v31 }
 0x149   :  { %2019 = vmatpush3.bf16.msra.mxu0 %v2297_v32  ;;  %2155 = vmatpush3.bf16.msra.mxu1 %v2296_v31  ;;  %v2307_v31 = vld [vmem:[%s2910_s1 + $0x288] sm:$0xff]  }
 0x14a   :  { %2020 = vmatprep.subr.bf16.mxu0 %v2298_v33  ;;  %2156 = vmatprep.subr.bf16.mxu1 %v2299_v34  ;;  %v2309_v33 = vld [vmem:[%s2910_s1 + $0x2c8] sm:$0xff]  }
 0x14d   :  { %2021 = vmatpush3.bf16.msra.mxu0 %v2300_v35  ;;  %2157 = vmatpush3.bf16.msra.mxu1 %v2299_v34  ;;  %v2308_v35 = vld [vmem:[%s2910_s1 + $0x248] sm:$0xff]  }
 0x14e   :  { %2022 = vmatprep.subr.bf16.mxu0 %v2301_v36  ;;  %2158 = vmatprep.subr.bf16.mxu1 %v2302_v37 }
 0x151   :  { %2023 = vmatpush3.bf16.msra.mxu0 %v2303_v38  ;;  %2159 = vmatpush3.bf16.msra.mxu1 %v2302_v37 }
 0x152   :  { %2046 = vmatprep.subr.bf16.mxu0 %v2304_v40  ;;  %2164 = vmatprep.subr.bf16.mxu1 %v2731_v41  ;;  %v2310_v40 = vld [vmem:[%s2910_s1 + $0x290] sm:$0xff]  }
 0x206   :  { %v1986_v42 = vpop.f32.mrb[0].mxu0 }
 0x207   :  { %v1987_v43 = vpop.f32.mrb[1].mxu0  ;;  %v2142_v44 = vpop.f32.mrb[12].mxu1 }
 0x208   :  { %v1988_v46 = vadd.f32 %v1987_v43, %v1986_v42  ;;  %v1989_v47 = vpop.f32.mrb[2].mxu0  ;;  %v685_v48 = vpop.f32.mrb[13].mxu1  ;;  %v2312_v42 = vld [vmem:[%s2910_s1 + $0x2d0] sm:$0xff]   ;;  %v2313_v43 = vld [vmem:[%s2910_s1 + $0x298] sm:$0xff]  }
 0x209   :  { %v1990_v49 = vpop.f32.mrb[3].mxu0  ;;  %v2143_v50 = vpop.f32.mrb[14].mxu1 }
 0x20a   :  { %v637_v51 = vadd.f32 %v1988_v46, %v1708_v45  ;;  %v1991_v52 = vadd.f32 %v1990_v49, %v1989_v47  ;;  %v688_v53 = vpop.f32.mrb[15].mxu1  ;;  %v2316_v46 = vld [vmem:[%s2910_s1 + $0x2a0] sm:$0xff]   ;;  %v2319_v49 = vld [vmem:[%s2910_s1 + $0x2a8] sm:$0xff]  }
 0x20b   :  { %v2317_v47 = vld [vmem:[%s2910_s1 + $0x260] sm:$0xff]  }
 0x20c   :  { %v686_v54 = vadd.f32 %v685_v48, %v637_v51  ;;  %v640_v55 = vadd.f32 %v1991_v52, %v1708_v45  ;;  %v2318_v48 = vld [vmem:[%s2910_s1 + $0x2e0] sm:$0xff]   ;;  %v2321_v51 = vld [vmem:[%s2910_s1 + $0x2e8] sm:$0xff]   ;;  %v2322_v52 = vld [vmem:[%s2910_s1 + $0x2b0] sm:$0xff]  }
 0x20e   :  { %v700_v56 = vadd.f32 %v686_v54, %v2447_v13  ;;  %v689_v57 = vadd.f32 %v688_v53, %v640_v55  ;;  %v1992_v58 = vpop.f32.mrb[4].mxu0  ;;  %v2323_v53 = vld [vmem:[%s2910_s1 + $0x270] sm:$0xff]   ;;  %v2325_v55 = vld [vmem:[%s2910_s1 + $0x2b8] sm:$0xff]  }
 0x20f   :  { %v1993_v59 = vpop.f32.mrb[5].mxu0  ;;  %v2324_v54 = vld [vmem:[%s2910_s1 + $0x2f0] sm:$0xff]  }
 0x210   :  { %v701_v60 = vadd.f32 %v689_v57, %v2452_v14  ;;  %v1994_v61 = vadd.f32 %v1993_v59, %v1992_v58  ;;  %v1995_v62 = vpop.f32.mrb[6].mxu0  ;;  %v2739_v0 = vmax.f32 %v700_v56, 0.0  ;;  %v2326_v56 = vld [vmem:[%s2910_s1 + $0x278] sm:$0xff]   ;;  %v2328_v58 = vld [vmem:[#allocation2 + $0x40] sm:$0xff]  }
 0x211   :  { %v1996_v63 = vpop.f32.mrb[7].mxu0  ;;  %v2327_v57 = vld [vmem:[%s2910_s1 + $0x2f8] sm:$0xff]  }
 0x212   :  { %v2741_v1 = vmax.f32 %v701_v60, 0.0  ;;  %v645_v2 = vadd.f32 %v1994_v61, %v1708_v45  ;;  %v1997_v3 = vadd.f32 %v1996_v63, %v1995_v62  ;;  %v720_v10 = vrot.slane %v2739_v0, 1  ;;  %v1793_v62 = vld [vmem:[%s2912_s3 + $0x2] ss:$0 sm:$0xff] }
 0x213   :  { %v708_v18 = vrot.slane %v2739_v0, 7 }
 0x214   :  { %v694_v4 = vadd.f32 %v2142_v44, %v645_v2  ;;  %v2745_v5 = vpack.c.bf16 %v2741_v1, %v2739_v0  ;;  %v648_v13 = vadd.f32 %v1997_v3, %v1708_v45  ;;  %v721_v7 = vrot.slane %v2741_v1, 1  ;;  %v2314_v44 = vld [vmem:[%s2910_s1 + $0x258] sm:$0xff]  }
 0x215   :  { %v709_v15 = vrot.slane %v2741_v1, 7  ;;  %v2315_v45 = vld [vmem:[%s2910_s1 + $0x2d8] sm:$0xff]  }
 0x216   :  { %v702_v6 = vadd.f32 %v694_v4, %v2479_v24  ;;  %968 = vmatprep.mubr.bf16.mxu0 %v2745_v5  ;;  %v697_v14 = vadd.f32 %v2143_v50, %v648_v13  ;;  %v726_v17 = vsel %vm60_vm3, %v720_v10, %v721_v7  ;;  %v2320_v50 = vld [vmem:[%s2910_s1 + $0x268] sm:$0xff]  }
 0x217   :  { %v714_v22 = vsel %vm47_vm1, %v708_v18, %v709_v15 }
 0x218   :  { %v2750_v8 = vmax.f32 %v702_v6, 0.0  ;;  %v703_v9 = vadd.f32 %v697_v14, %v2466_v19 }
 0x21a   :  { %v722_v11 = vrot.slane %v2750_v8, 1  ;;  %v2756_v16 = vmax.f32 %v703_v9, 0.0  ;;  %v710_v34 = vrot.slane %v2750_v8, 7 }
 0x21c   :  { %v725_v24 = vsel %vm60_vm3, %v721_v7, %v722_v11  ;;  %v711_v21 = vrot.slane %v2756_v16, 7  ;;  %v723_v19 = vrot.slane %v2756_v16, 1  ;;  %v2783_v32 = vpack.c.bf16 %v2756_v16, %v2750_v8 }
 0x21d   :  { %v1825_v20 = vpack.c.bf16 %v725_v24, %v726_v17  ;;  %v713_v37 = vsel %vm47_vm1, %v709_v15, %v710_v34 }
 0x21e   :  { %v715_v23 = vsel %vm47_vm1, %v711_v21, %v708_v18  ;;  %v724_v25 = vsel %vm60_vm3, %v722_v11, %v723_v19  ;;  %v727_v26 = vsel %vm60_vm3, %v723_v19, %v720_v10  ;;  %v712_v36 = vsel %vm47_vm1, %v710_v34, %v711_v21 }
 0x21f   :  { %2160 = vmatprep.mubr.msk.bf16.mxu1 %vm2512_vm6, %v1825_v20  ;;  %v1819_v28 = vpack.c.bf16 %v714_v22, %v715_v23  ;;  %v1828_v29 = vpack.c.bf16 %v727_v26, %v724_v25  ;;  %v1822_v38 = vpack.c.bf16 %v712_v36, %v713_v37 }
 0x221   :  { %1820 = vmatmul.mubr.msk.bf16.vlgmr.msra.gmra.mrb[8].mxu0 %vm2493_vm5, %v1819_v28  ;;  %2161 = vmatmul.mubr.msk.bf16.vlgmr.msra.gmra.mrb[16].mxu1 %vm2512_vm6, %v1828_v29 }
 0x222   :  { %976 = vmatprep.mubr.bf16.mxu0 %v2783_v32  ;;  %2047 = vmatpush3.bf16.msra.mxu0 %v2305_v27 }
 0x223   :  { %2165 = vmatpush3.bf16.msra.mxu1 %v2731_v41  ;;  %2048 = vmatprep.subr.bf16.mxu0 %v2307_v31  ;;  %v2311_v41 = vld [vmem:[%s2910_s1 + $0x250] sm:$0xff]  }
 0x224   :  { %2166 = vmatprep.subr.bf16.mxu1 %v2309_v33 }
 0x226   :  { %2049 = vmatpush3.bf16.msra.mxu0 %v2308_v35 }
 0x227   :  { %2167 = vmatpush3.bf16.msra.mxu1 %v2309_v33  ;;  %2050 = vmatprep.subr.bf16.mxu0 %v2310_v40 }
 0x228   :  { %2168 = vmatprep.subr.bf16.mxu1 %v2312_v42 }
 0x229   :  { %1823 = vmatmul.mubr.msk.bf16.gmra.mrb[12].mxu0 %vm2493_vm5, %v1822_v38 }
 0x22a   :  { %2051 = vmatpush3.bf16.msra.mxu0 %v2311_v41 }
 0x22b   :  { %2169 = vmatpush3.bf16.msra.mxu1 %v2312_v42  ;;  %2052 = vmatprep.subr.bf16.mxu0 %v2313_v43 }
 0x22c   :  { %2170 = vmatprep.subr.bf16.mxu1 %v2315_v45 }
 0x22e   :  { %2053 = vmatpush3.bf16.msra.mxu0 %v2314_v44 }
 0x22f   :  { %2171 = vmatpush3.bf16.msra.mxu1 %v2315_v45  ;;  %2054 = vmatprep.subr.bf16.mxu0 %v2316_v46 }
 0x230   :  { %2172 = vmatprep.subr.bf16.mxu1 %v2318_v48 }
 0x232   :  { %2055 = vmatpush3.bf16.msra.mxu0 %v2317_v47 }
 0x233   :  { %2173 = vmatpush3.bf16.msra.mxu1 %v2318_v48  ;;  %2056 = vmatprep.subr.bf16.mxu0 %v2319_v49 }
 0x234   :  { %2174 = vmatprep.subr.bf16.mxu1 %v2321_v51 }
 0x236   :  { %2057 = vmatpush3.bf16.msra.mxu0 %v2320_v50 }
 0x237   :  { %2175 = vmatpush3.bf16.msra.mxu1 %v2321_v51  ;;  %2058 = vmatprep.subr.bf16.mxu0 %v2322_v52 }
 0x238   :  { %2176 = vmatprep.subr.bf16.mxu1 %v2324_v54 }
 0x23a   :  { %2059 = vmatpush3.bf16.msra.mxu0 %v2323_v53 }
 0x23b   :  { %2177 = vmatpush3.bf16.msra.mxu1 %v2324_v54  ;;  %2060 = vmatprep.subr.bf16.mxu0 %v2325_v55  ;;  %v2329_v54 = vld [vmem:[#allocation2 + $0x48] sm:$0xff]  }
 0x23c   :  { %2178 = vmatprep.subr.bf16.mxu1 %v2327_v57 }
 0x23e   :  { %2061 = vmatpush3.bf16.msra.mxu0 %v2326_v56  ;;  %v2330_v56 = vld [vmem:[#allocation2 + $0x50] sm:$0xff]  }
 0x23f   :  { %2179 = vmatpush3.bf16.msra.mxu1 %v2327_v57  ;;  %2184 = vmatprep.subr.bf16.mxu0 %v2328_v58  ;;  %v2332_v57 = vld [vmem:[#allocation2 + $0x60] sm:$0xff]  }
 0x2f4   :  { %v2024_v59 = vpop.f32.mrb[8].mxu0  ;;  %v2162_v60 = vpop.f32.mrb[16].mxu1 }
 0x2f5   :  { %v2025_v61 = vpop.f32.mrb[9].mxu0  ;;  %v1019_v63 = vpop.f32.mrb[17].mxu1 }
 0x2f6   :  { %v2026_v2 = vadd.f32 %v2025_v61, %v2024_v59  ;;  %v2027_v3 = vpop.f32.mrb[10].mxu0  ;;  %v2163_v4 = vpop.f32.mrb[18].mxu1  ;;  %v2333_v59 = vld [vmem:[#allocation2 + $0x68] sm:$0xff]   ;;  %v2339_v61 = vld [vmem:[#allocation2 + $0x18] sm:$0xff]  }
 0x2f7   :  { %v2028_v13 = vpop.f32.mrb[11].mxu0  ;;  %v1022_v6 = vpop.f32.mrb[19].mxu1 }
 0x2f8   :  { %v971_v14 = vadd.f32 %v2026_v2, %v1793_v62  ;;  %v2029_v7 = vadd.f32 %v2028_v13, %v2027_v3  ;;  %v2342_v2 = vld [vmem:[#allocation2 + $0x30] sm:$0xff]   ;;  %v2343_v3 = vld [vmem:[#allocation2 + $0x38] sm:$0xff]  }
 0x2fa   :  { %v1020_v9 = vadd.f32 %v1019_v63, %v971_v14  ;;  %v974_v10 = vadd.f32 %v2029_v7, %v1793_v62  ;;  %v2341_v63 = vld [vmem:[#allocation2 + $0x28] sm:$0xff]  }
 0x2fc   :  { %v1034_v11 = vmax.f32 %v1020_v9, 0.0  ;;  %v1023_v15 = vadd.f32 %v1022_v6, %v974_v10  ;;  %v2030_v24 = vpop.f32.mrb[12].mxu0  ;;  %v1878_v6 = vld [vmem:[%s2912_s3 + $0x3] ss:$0 sm:$0xff] }
 0x2fd   :  { %v2031_v17 = vpop.f32.mrb[13].mxu0 }
 0x2fe   :  { %v1035_v18 = vmax.f32 %v1023_v15, 0.0  ;;  %v2032_v21 = vadd.f32 %v2031_v17, %v2030_v24  ;;  %v2033_v19 = vpop.f32.mrb[14].mxu0  ;;  %v1038_v20 = vrot.slane %v1034_v11, 7  ;;  %v1050_v22 = vrot.slane %v1034_v11, 1 }
 0x2ff   :  { %v2034_v23 = vpop.f32.mrb[15].mxu0 }
 0x300   :  { %v1039_v25 = vrot.slane %v1035_v18, 7  ;;  %v1051_v26 = vrot.slane %v1035_v18, 1  ;;  %v979_v27 = vadd.f32 %v2032_v21, %v1793_v62  ;;  %v2035_v28 = vadd.f32 %v2034_v23, %v2033_v19 }
 0x301   :  { %v1064_v29 = vpack.c.bf16 %v1035_v18, %v1034_v11 }
 0x302   :  { %v1044_v31 = vsel %vm47_vm1, %v1038_v20, %v1039_v25  ;;  %v1028_v33 = vadd.f32 %v2162_v60, %v979_v27  ;;  %v982_v34 = vadd.f32 %v2035_v28, %v1793_v62  ;;  %v1056_v35 = vsel %vm60_vm3, %v1050_v22, %v1051_v26  ;;  %v2336_v60 = vld [vmem:[#allocation2] sm:$0xff]  }
 0x303   :  { %1298 = vmatprep.mubr.bf16.mxu0 %v1064_v29  ;;  %v2340_v62 = vld [vmem:[#allocation2 + $0x20] sm:$0xff]  }
 0x304   :  { %v1036_v36 = vmax.f32 %v1028_v33, 0.0  ;;  %v1031_v37 = vadd.f32 %v2163_v4, %v982_v34 }
 0x306   :  { %v1040_v38 = vrot.slane %v1036_v36, 7  ;;  %v1052_v40 = vrot.slane %v1036_v36, 1  ;;  %v1037_v41 = vmax.f32 %v1031_v37, 0.0 }
 0x308   :  { %v1041_v42 = vrot.slane %v1037_v41, 7  ;;  %v1053_v43 = vrot.slane %v1037_v41, 1  ;;  %v1055_v44 = vsel %vm60_vm3, %v1051_v26, %v1052_v40  ;;  %v1065_v45 = vpack.c.bf16 %v1037_v41, %v1036_v36 }
 0x309   :  { %v1910_v46 = vpack.c.bf16 %v1055_v44, %v1056_v35  ;;  %v1043_v47 = vsel %vm47_vm1, %v1039_v25, %v1040_v38 }
 0x30a   :  { %v1045_v48 = vsel %vm47_vm1, %v1041_v42, %v1038_v20  ;;  %v1054_v49 = vsel %vm60_vm3, %v1052_v40, %v1053_v43  ;;  %v1057_v50 = vsel %vm60_vm3, %v1053_v43, %v1050_v22  ;;  %v1042_v51 = vsel %vm47_vm1, %v1040_v38, %v1041_v42 }
 0x30b   :  { %v1904_v52 = vpack.c.bf16 %v1044_v31, %v1045_v48  ;;  %2180 = vmatprep.mubr.msk.bf16.mxu1 %vm2512_vm6, %v1910_v46  ;;  %v1913_v53 = vpack.c.bf16 %v1057_v50, %v1054_v49  ;;  %v1907_v55 = vpack.c.bf16 %v1042_v51, %v1043_v47 }
 0x30d   :  { %1905 = vmatmul.mubr.msk.bf16.vlgmr.msra.gmra.mrb[16].mxu0 %vm2493_vm5, %v1904_v52  ;;  %2181 = vmatmul.mubr.msk.bf16.vlgmr.msra.gmra.mrb[20].mxu1 %vm2512_vm6, %v1913_v53 }
 0x30e   :  { %2185 = vmatpush3.bf16.msra.mxu0 %v2328_v58  ;;  %1306 = vmatprep.mubr.bf16.mxu0 %v1065_v45  ;;  %v2335_v58 = vld [vmem:[#allocation2 + $0x78] sm:$0xff]  }
 0x30f   :  { %2186 = vmatprep.subr.bf16.mxu0 %v2329_v54 }
 0x312   :  { %2187 = vmatpush3.bf16.msra.mxu0 %v2329_v54 }
 0x313   :  { %2188 = vmatprep.subr.bf16.mxu0 %v2330_v56 }
 0x315   :  { %1908 = vmatmul.mubr.msk.bf16.gmra.mrb[20].mxu0 %vm2493_vm5, %v1907_v55 }
 0x316   :  { %2189 = vmatpush3.bf16.msra.mxu0 %v2330_v56  ;;  %2200 = vmatprep.mubr.bf16.mxu0 %v2745_v5  ;;  %v2338_v5 = vld [vmem:[#allocation2 + $0x10] sm:$0xff]  }
 0x317   :  { %2190 = vmatprep.subr.bf16.mxu0 %v2331_v12 }
 0x31a   :  { %2191 = vmatpush3.bf16.msra.mxu0 %v2331_v12 }
 0x31b   :  { %2192 = vmatprep.subr.bf16.mxu0 %v2332_v57 }
 0x31e   :  { %2193 = vmatpush3.bf16.msra.mxu0 %v2332_v57 }
 0x31f   :  { %2194 = vmatprep.subr.bf16.mxu0 %v2333_v59 }
 0x322   :  { %2195 = vmatpush3.bf16.msra.mxu0 %v2333_v59 }
 0x323   :  { %2196 = vmatprep.subr.bf16.mxu0 %v2334_v39 }
 0x326   :  { %2197 = vmatpush3.bf16.msra.mxu0 %v2334_v39 }
 0x327   :  { %2198 = vmatprep.subr.bf16.mxu0 %v2335_v58 }
 0x32a   :  { %2199 = vmatpush3.bf16.msra.mxu0 %v2335_v58 }
 0x32b   :  { %2204 = vmatprep.subr.bf16.mxu0 %v2336_v60 }
 0x32d   :  { %2201 = vmatmul.mubr.bf16.vlgmr.msra.gmra.mrb[24].mxu0 %v2783_v32 }
 0x32e   :  { %2205 = vmatpush3.bf16.msra.mxu0 %v2336_v60 }
 0x32f   :  { %2206 = vmatprep.subr.bf16.mxu0 %v2337_v30 }
 0x332   :  { %2207 = vmatpush3.bf16.msra.mxu0 %v2337_v30 }
 0x333   :  { %2208 = vmatprep.subr.bf16.mxu0 %v2338_v5 }
 0x336   :  { %2209 = vmatpush3.bf16.msra.mxu0 %v2338_v5 }
 0x337   :  { %2210 = vmatprep.subr.bf16.mxu0 %v2339_v61 }
 0x33a   :  { %2211 = vmatpush3.bf16.msra.mxu0 %v2339_v61 }
 0x33b   :  { %2212 = vmatprep.subr.bf16.mxu0 %v2340_v62 }
 0x33e   :  { %2213 = vmatpush3.bf16.msra.mxu0 %v2340_v62 }
 0x33f   :  { %2214 = vmatprep.subr.bf16.mxu0 %v2341_v63 }
 0x342   :  { %2215 = vmatpush3.bf16.msra.mxu0 %v2341_v63 }
 0x343   :  { %2216 = vmatprep.subr.bf16.mxu0 %v2342_v2 }
 0x346   :  { %2217 = vmatpush3.bf16.msra.mxu0 %v2342_v2 }
 0x347   :  { %2218 = vmatprep.subr.bf16.mxu0 %v2343_v3 }
 0x34a   :  { %2219 = vmatpush3.bf16.msra.mxu0 %v2343_v3 }
 0x3e0   :  { %v2062_v32 = vpop.f32.mrb[16].mxu0  ;;  %v2182_v4 = vpop.f32.mrb[20].mxu1 }
 0x3e1   :  { %v2063_v13 = vpop.f32.mrb[17].mxu0  ;;  %v1349_v14 = vpop.f32.mrb[21].mxu1 }
 0x3e2   :  { %v2064_v7 = vadd.f32 %v2063_v13, %v2062_v32  ;;  %v2065_v9 = vpop.f32.mrb[18].mxu0  ;;  %v2183_v10 = vpop.f32.mrb[22].mxu1 }
 0x3e3   :  { %v2066_v11 = vpop.f32.mrb[19].mxu0  ;;  %v1352_v15 = vpop.f32.mrb[23].mxu1 }
 0x3e4   :  { %v1301_v24 = vadd.f32 %v2064_v7, %v1878_v6  ;;  %v2067_v17 = vadd.f32 %v2066_v11, %v2065_v9 }
 0x3e6   :  { %v1350_v18 = vadd.f32 %v1349_v14, %v1301_v24  ;;  %v1304_v21 = vadd.f32 %v2067_v17, %v1878_v6 }
 0x3e8   :  { %v1364_v19 = vadd.f32 %v1350_v18, %v2739_v0  ;;  %v1353_v20 = vadd.f32 %v1352_v15, %v1304_v21  ;;  %v2068_v22 = vpop.f32.mrb[20].mxu0 }
 0x3e9   :  { %v2069_v23 = vpop.f32.mrb[21].mxu0 }
 0x3ea   :  { %v1365_v25 = vadd.f32 %v1353_v20, %v2741_v1  ;;  %v2070_v26 = vadd.f32 %v2069_v23, %v2068_v22  ;;  %v2071_v27 = vpop.f32.mrb[22].mxu0  ;;  %v1368_v29 = vmax.f32 %v1364_v19, 0.0  ;;  %v1931_v1 = vld [vmem:[%s2912_s3 + $0x4] ss:$0 sm:$0xff] }
 0x3eb   :  { %v2072_v28 = vpop.f32.mrb[23].mxu0 }
 0x3ec   :  { %v1369_v31 = vmax.f32 %v1365_v25, 0.0  ;;  %v1309_v33 = vadd.f32 %v2070_v26, %v1878_v6  ;;  %v2073_v34 = vadd.f32 %v2072_v28, %v2071_v27 }
 0x3ee   :  { %v1358_v35 = vadd.f32 %v2182_v4, %v1309_v33  ;;  %v1312_v36 = vadd.f32 %v2073_v34, %v1878_v6  ;;  %v1372_v37 = vpack.c.bf16 %v1369_v31, %v1368_v29 }
 0x3f0   :  { %v1366_v38 = vadd.f32 %v1358_v35, %v2750_v8  ;;  %v1361_v40 = vadd.f32 %v2183_v10, %v1312_v36  ;;  %2220 = vmatprep.mubr.bf16.mxu0 %v1372_v37 }
 0x3f2   :  { %v1367_v0 = vadd.f32 %v1361_v40, %v2756_v16  ;;  %v1370_v41 = vmax.f32 %v1366_v38, 0.0 }
 0x3f4   :  { %v1371_v42 = vmax.f32 %v1367_v0, 0.0 }
 0x3f6   :  { %v1373_v43 = vpack.c.bf16 %v1371_v42, %v1370_v41 }
 0x3f8   :  { %2221 = vmatmul.mubr.bf16.vlgmr.msra.gmra.mrb[24].mxu0 %v1373_v43 }
 0x4cb   :  { %v2222_v44 = vpop.f32.mrb[24].mxu0 }
 0x4cc   :  { %v1608_v45 = vadd.f32 %v2222_v44, %v1931_v1  ;;  %v1586_v46 = vpop.f32.mrb[25].mxu0 }
 0x4cd   :  { %v1606_v47 = vadd.f32 %v1931_v1, %v1586_v46  ;;  %v2223_v48 = vpop.f32.mrb[26].mxu0 }
 0x4ce   :  { %v1612_v49 = vmax.f32 %v1608_v45, 0.0  ;;  %v1609_v50 = vadd.f32 %v2223_v48, %v1931_v1  ;;  %v1589_v8 = vpop.f32.mrb[27].mxu0 }
 0x4cf   :  { %v1610_v51 = vmax.f32 %v1606_v47, 0.0  ;;  %v1607_v52 = vadd.f32 %v1931_v1, %v1589_v8 }
 0x4d0   :  { %1616 = vst [vmem:[%s2913_s4 + $0x10] sm:$0xff] %v1612_v49  ;;  %v1613_v16 = vmax.f32 %v1609_v50, 0.0 }
 0x4d1   :  { %1614 = vst [vmem:[%s2913_s4] sm:$0xff] %v1610_v51  ;;  %v1611_v53 = vmax.f32 %v1607_v52, 0.0 }
 0x4d2   :  { %1617 = vst [vmem:[%s2913_s4 + $0x18] sm:$0xff] %v1613_v16 }
 0x4d3   :  { %1615 = vst [vmem:[%s2913_s4 + $0x8] sm:$0xff] %v1611_v53 }
 0x4d4   :  { %1622 = vsyncpa [#allocation3], 1 }

</bundles_post_ra>
